<compile_context>
chip_gen: v5e
topology: v5e:2x2
jax: 0.10.0
libtpu: 0.0.40
codegen_flags: <defaults>
</compile_context>

<pallas_src>
import functools

import jax
import jax.numpy as jnp
from jax import lax
from jax.experimental import pallas as pl
from jax.experimental.pallas import tpu as pltpu


def _round_up(x: int, m: int) -> int:
    return ((x + m - 1) // m) * m


def _pad_to(a, shape, dtype):
    """Cast + zero-pad `a` to `shape`; no copy when already that shape."""
    a = a.astype(dtype)
    if a.shape == tuple(shape):
        return a
    return jnp.zeros(shape, dtype).at[tuple(slice(0, s) for s in a.shape)].set(a)


def _vmem_budget_bytes() -> int:
    """Per-generation scoped-VMEM budget (v5e/v6e: 128 MiB phys, v7x: 64 MiB)."""
    cap = 64 * 1024 * 1024
    try:
        cap = int(getattr(pltpu.get_tpu_info(), "vmem_capacity_bytes", cap))
    except Exception:
        pass
    if cap >= 128 * 1024 * 1024:
        return 100 * 1024 * 1024          # v5e / v6e
    return 48 * 1024 * 1024               # v7x


def _mxu_cast(bf16_ops: bool):
    # H is binary so bf16 is exact for it; the flag only trades mantissa of
    # XW / edge_feat operands for ~2-4x MXU throughput. Default: exact f32.
    if bf16_ops:
        return lambda a: a.astype(jnp.bfloat16)
    return lambda a: a.astype(jnp.float32)


# ---------------------------------------------------------------------------
# Fused single-call kernel: whole problem resident in VMEM.
# ---------------------------------------------------------------------------
def _fused_kernel(x_ref, h_ref, w_ref, b_ref, o_ref, *, bf16_ops):
    cast = _mxu_cast(bf16_ops)
    h = h_ref[...].astype(jnp.float32)                               # (N, M) binary
    xw = jnp.dot(cast(x_ref[...]), cast(w_ref[...]),
                 preferred_element_type=jnp.float32)                 # (N, C)
    # H^T @ XW without materializing H^T: contract axis 0 of both operands.
    ef = lax.dot_general(cast(h), cast(xw), (((0,), (0,)), ((), ())),
                         preferred_element_type=jnp.float32)         # (M, C)
    e_deg = jnp.sum(h, axis=0, keepdims=True)                        # (1, M)
    b_inv = jnp.where(e_deg > 0.0, 1.0 / e_deg, 0.0)
    n_deg = jnp.sum(h, axis=1, keepdims=True)                        # (N, 1)
    d_inv = jnp.where(n_deg > 0.0, 1.0 / n_deg, 0.0)
    h_b = h * b_inv                                                  # lane broadcast
    out = jnp.dot(cast(h_b), cast(ef), preferred_element_type=jnp.float32)
    out = out * d_inv + b_ref[...]
    o_ref[...] = jnp.maximum(out, 0.0).astype(o_ref.dtype)


# ---------------------------------------------------------------------------
# Tiled path, phase 0 (only when M is tiled): XW = X @ W.
# ---------------------------------------------------------------------------
def _xw_kernel(x_ref, w_ref, xw_ref, *, bf16_ops):
    cast = _mxu_cast(bf16_ops)
    xw_ref[...] = jnp.dot(cast(x_ref[...]), cast(w_ref[...]),
                          preferred_element_type=jnp.float32).astype(xw_ref.dtype)


# ---------------------------------------------------------------------------
# Tiled path, phase 1 (single M tile): reduction over node tiles.
#   edge_feat += H_tile^T @ (X_tile @ W);  edge_deg += sum_rows(H_tile)
# ---------------------------------------------------------------------------
def _edge_agg_single_m_kernel(x_ref, h_ref, w_ref, ef_ref, ed_ref, *, bf16_ops):
    cast = _mxu_cast(bf16_ops)
    ni = pl.program_id(0)

    @pl.when(ni == 0)
    def _():
        ef_ref[...] = jnp.zeros_like(ef_ref)
        ed_ref[...] = jnp.zeros_like(ed_ref)

    h = h_ref[...].astype(jnp.float32)                               # (tn, M_pad)
    xw = jnp.dot(cast(x_ref[...]), cast(w_ref[...]),
                 preferred_element_type=jnp.float32)                 # (tn, C_pad)
    ef_ref[...] += lax.dot_general(cast(h), cast(xw), (((0,), (0,)), ((), ())),
                                   preferred_element_type=jnp.float32)
    ed_ref[...] += jnp.sum(h, axis=0, keepdims=True)                 # (1, M_pad)


# ---------------------------------------------------------------------------
# Tiled path, phase 1 (M tiled): grid = (m_tiles [parallel], n_tiles [reduce]).
# ---------------------------------------------------------------------------
def _edge_agg_kernel(xw_ref, h_ref, ef_ref, ed_ref, *, bf16_ops):
    cast = _mxu_cast(bf16_ops)
    ni = pl.program_id(1)

    @pl.when(ni == 0)
    def _():
        ef_ref[...] = jnp.zeros_like(ef_ref)
        ed_ref[...] = jnp.zeros_like(ed_ref)

    h = h_ref[...].astype(jnp.float32)                               # (tn, tm)
    ef_ref[...] += lax.dot_general(cast(h), cast(xw_ref[...]),
                                   (((0,), (0,)), ((), ())),
                                   preferred_element_type=jnp.float32)
    ed_ref[...] += jnp.sum(h, axis=0, keepdims=True)                 # (1, tm)


# ---------------------------------------------------------------------------
# Tiled path, phase 2: grid = (n_tiles [parallel], m_tiles [reduce]).
#   out = relu(Dinv * ((H * Binv) @ edge_feat) + bias)
# ---------------------------------------------------------------------------
def _node_update_kernel(h_ref, ef_ref, ed_ref, b_ref, o_ref,
                        acc_ref, deg_ref, *, bf16_ops):
    cast = _mxu_cast(bf16_ops)
    mi = pl.program_id(1)

    @pl.when(mi == 0)
    def _():
        acc_ref[...] = jnp.zeros_like(acc_ref)
        deg_ref[...] = jnp.zeros_like(deg_ref)

    h = h_ref[...].astype(jnp.float32)                               # (tn, tm)
    e_deg = ed_ref[...]                                              # (1, tm)
    b_inv = jnp.where(e_deg > 0.0, 1.0 / e_deg, 0.0)
    h_b = h * b_inv                                                  # lane broadcast
    acc_ref[...] += jnp.dot(cast(h_b), cast(ef_ref[...]),
                            preferred_element_type=jnp.float32)
    deg_ref[...] += jnp.sum(h, axis=1, keepdims=True)                # (tn, 1)

    @pl.when(mi == pl.num_programs(1) - 1)
    def _():
        d_inv = jnp.where(deg_ref[...] > 0.0, 1.0 / deg_ref[...], 0.0)
        out = acc_ref[...] * d_inv + b_ref[...]
        o_ref[...] = jnp.maximum(out, 0.0).astype(o_ref.dtype)


def hypergraph1_forward(x, adj, weight, bias, *, tile_n=None, tile_m=None,
                        force_tiled=False, use_bf16_matmul=False):
    """HyperGraph1.forward(x, adj) == relu(HypergraphConv(x, adj)).

    x      : (N, F) float32 node features
    adj    : (N, M) dense binary incidence matrix (node x hyperedge)
    weight : (F, C) float32 linear weight (Theta)
    bias   : (C,)   float32
    """
    x = jnp.asarray(x, jnp.float32)
    adj = jnp.asarray(adj)
    weight = jnp.asarray(weight, jnp.float32)
    bias = jnp.asarray(bias, jnp.float32)

    n, f = x.shape
    m = adj.shape[1]
    c = weight.shape[1]

    f_pad = _round_up(f, 128)
    c_pad = _round_up(c, 128)
    m_pad = _round_up(m, 128)

    vmem_budget = _vmem_budget_bytes()
    bf16 = bool(use_bf16_matmul)

    # ----------------- fused fast path (small problems) ---------------------
    n8 = _round_up(n, 8)
    fused_bytes = (4 * (n8 * (f_pad + m_pad + 2 * c_pad)
                        + f_pad * c_pad + 2 * m_pad * c_pad + c_pad)
                   + 2 * n8 * m_pad)
    if (not force_tiled) and 2 * fused_bytes <= vmem_budget:
        x_p = _pad_to(x, (n8, f_pad), jnp.float32)
        h_p = _pad_to(adj, (n8, m_pad), jnp.bfloat16)        # binary -> exact
        w_p = _pad_to(weight, (f_pad, c_pad), jnp.float32)
        b_p = _pad_to(bias.reshape(1, -1), (1, c_pad), jnp.float32)
        out = pl.pallas_call(
            functools.partial(_fused_kernel, bf16_ops=bf16),
            out_shape=jax.ShapeDtypeStruct((n8, c_pad), jnp.float32),
            compiler_params=pltpu.CompilerParams(vmem_limit_bytes=vmem_budget),
        )(x_p, h_p, w_p, b_p)
        return out[:n, :c]

    # ----------------- general tiled path ------------------------------------
    # M tiling bounds the resident accumulator (important on v7x: 64 MiB VMEM)
    # and provides a parallel phase-1 axis for both v7x TensorCores.
    if tile_m is not None:
        tm = max(128, _round_up(int(tile_m), 128))
    else:
        tm_cap = 8 * 1024 * 1024
        tm = max(128, min(m_pad, ((tm_cap // (c_pad * 4)) // 128) * 128))
    tm = min(tm, m_pad)
    m_pad = _round_up(m, tm)
    m_tiles = m_pad // tm

    tn = tile_n if tile_n is not None else (512 if vmem_budget > 64 * 1024 * 1024 else 256)
    if n <= tn:
        tn = _round_up(n, 8)

    def _vmem_est(tn_):
        p0 = 2 * tn_ * f_pad * 4 + f_pad * c_pad * 4 + 2 * tn_ * c_pad * 4
        p1 = 2 * (tn_ * c_pad * 4 + tn_ * tm * 2) + 2 * tm * (c_pad + 128) * 4
        p1s = (2 * (tn_ * f_pad * 4 + tn_ * m_pad * 2) + f_pad * c_pad * 4
               + 2 * m_pad * (c_pad + 128) * 4)
        p2 = (2 * (tn_ * tm * 2 + tm * c_pad * 4) + 2 * tn_ * c_pad * 4
              + tn_ * (c_pad + 128) * 4)
        return max(p2, p1s if m_tiles == 1 else max(p0, p1)) + 64 * 1024

    while tn > 256 and _vmem_est(tn) > vmem_budget:
        tn = max(256, tn // 2)
    # TODO(synk): ragged last N tile is still handled by zero-padding N up to a
    # tile multiple instead of in-kernel masking.
    n_pad = _round_up(n, tn)
    n_tiles = n_pad // tn

    x_p = _pad_to(x, (n_pad, f_pad), jnp.float32)
    h_p = _pad_to(adj, (n_pad, m_pad), jnp.bfloat16)          # binary -> exact
    w_p = _pad_to(weight, (f_pad, c_pad), jnp.float32)
    b_p = _pad_to(bias.reshape(1, -1), (1, c_pad), jnp.float32)

    def _cp(sem):
        return pltpu.CompilerParams(dimension_semantics=sem,
                                    vmem_limit_bytes=vmem_budget)

    if m_tiles == 1:
        # Phase 1: edge_feat / edge_deg reduction over node tiles.
        edge_feat, edge_deg = pl.pallas_call(
            functools.partial(_edge_agg_single_m_kernel, bf16_ops=bf16),
            out_shape=(jax.ShapeDtypeStruct((m_pad, c_pad), jnp.float32),
                       jax.ShapeDtypeStruct((1, m_pad), jnp.float32)),
            grid=(n_tiles,),
            in_specs=[pl.BlockSpec((tn, f_pad), lambda ni: (ni, 0)),
                      pl.BlockSpec((tn, m_pad), lambda ni: (ni, 0)),
                      pl.BlockSpec((f_pad, c_pad), lambda ni: (0, 0))],
            out_specs=(pl.BlockSpec((m_pad, c_pad), lambda ni: (0, 0)),
                       pl.BlockSpec((1, m_pad), lambda ni: (0, 0))),
            compiler_params=_cp(("arbitrary",)),
            cost_estimate=pl.CostEstimate(
                flops=2 * n_pad * c_pad * (f_pad + m_pad) + 2 * n_pad * m_pad,
                transcendentals=0,
                bytes_accessed=4 * (n_pad * f_pad + f_pad * c_pad
                                    + m_pad * c_pad + m_pad) + 2 * n_pad * m_pad),
        )(x_p, h_p, w_p)
    else:
        # Phase 0: XW hoisted so it is not recomputed per M tile.
        xw = pl.pallas_call(
            functools.partial(_xw_kernel, bf16_ops=bf16),
            out_shape=jax.ShapeDtypeStruct((n_pad, c_pad), jnp.float32),
            grid=(n_tiles,),
            in_specs=[pl.BlockSpec((tn, f_pad), lambda ni: (ni, 0)),
                      pl.BlockSpec((f_pad, c_pad), lambda ni: (0, 0))],
            out_specs=pl.BlockSpec((tn, c_pad), lambda ni: (ni, 0)),
            compiler_params=_cp(("parallel",)),
        )(x_p, w_p)
        # Phase 1: M parallel x N reduction.
        edge_feat, edge_deg = pl.pallas_call(
            functools.partial(_edge_agg_kernel, bf16_ops=bf16),
            out_shape=(jax.ShapeDtypeStruct((m_pad, c_pad), jnp.float32),
                       jax.ShapeDtypeStruct((1, m_pad), jnp.float32)),
            grid=(m_tiles, n_tiles),
            in_specs=[pl.BlockSpec((tn, c_pad), lambda mi, ni: (ni, 0)),
                      pl.BlockSpec((tn, tm), lambda mi, ni: (ni, mi))],
            out_specs=(pl.BlockSpec((tm, c_pad), lambda mi, ni: (mi, 0)),
                       pl.BlockSpec((1, tm), lambda mi, ni: (0, mi))),
            compiler_params=_cp(("parallel", "arbitrary")),
            cost_estimate=pl.CostEstimate(
                flops=2 * n_pad * m_pad * c_pad + 2 * n_pad * m_pad,
                transcendentals=0,
                bytes_accessed=4 * (m_tiles * n_pad * c_pad + m_pad * c_pad + m_pad)
                               + 2 * n_pad * m_pad),
        )(xw, h_p)

    # Phase 2: N parallel x M reduction, bias + ReLU fused, lane-dense store.
    out_p = pl.pallas_call(
        functools.partial(_node_update_kernel, bf16_ops=bf16),
        out_shape=jax.ShapeDtypeStruct((n_pad, c_pad), jnp.float32),
        grid=(n_tiles, m_tiles),
        in_specs=[pl.BlockSpec((tn, tm), lambda ni, mi: (ni, mi)),
                  pl.BlockSpec((tm, c_pad), lambda ni, mi: (mi, 0)),
                  pl.BlockSpec((1, tm), lambda ni, mi: (0, mi)),
                  pl.BlockSpec((1, c_pad), lambda ni, mi: (0, 0))],
        out_specs=pl.BlockSpec((tn, c_pad), lambda ni, mi: (ni, 0)),
        scratch_shapes=[pltpu.VMEM((tn, c_pad), jnp.float32),
                        pltpu.VMEM((tn, 1), jnp.float32)],
        compiler_params=_cp(("parallel", "arbitrary")),
        cost_estimate=pl.CostEstimate(
            flops=2 * n_pad * m_pad * c_pad + 3 * n_pad * m_pad + 3 * n_pad * c_pad,
            transcendentals=0,
            bytes_accessed=2 * n_pad * m_pad
                           + 4 * (n_tiles * m_pad * c_pad + n_pad * c_pad
                                  + m_pad + c_pad)),
    )(h_p, edge_feat, edge_deg, b_p)

    return out_p[:n, :c]


def _reference(x, adj, weight, bias):
    """Pure-JAX reference (highest matmul precision) for sanity check."""
    hp = lax.Precision.HIGHEST
    xw = jnp.dot(x, weight, precision=hp)
    edge_deg = adj.sum(axis=0)
    b_inv = jnp.where(edge_deg > 0, 1.0 / edge_deg, 0.0)
    node_deg = adj.sum(axis=1)
    d_inv = jnp.where(node_deg > 0, 1.0 / node_deg, 0.0)
    edge_feat = jnp.dot(adj.T, xw, precision=hp) * b_inv[:, None]
    out = jnp.dot(adj, edge_feat, precision=hp) * d_inv[:, None] + bias[None, :]
    return jnp.maximum(out, 0.0)


def _make_inputs(key, n, m, nfeat, nclass, p=0.4):
    kx, kh, kw, kb = jax.random.split(key, 4)
    x = jax.random.normal(kx, (n, nfeat), dtype=jnp.float32)
    adj = jax.random.bernoulli(kh, p=p, shape=(n, m)).astype(jnp.float32)
    limit = (6.0 / (nfeat + nclass)) ** 0.5
    weight = jax.random.uniform(kw, (nfeat, nclass), minval=-limit, maxval=limit,
                                dtype=jnp.float32)
    bias = jax.random.uniform(kb, (nclass,), minval=-0.1, maxval=0.1,
                              dtype=jnp.float32)
    return x, adj, weight, bias


if __name__ == "__main__":
    # TODO(synk): self.dropout_p is stored in __init__ but never used in
    # HyperGraph1.forward, so dropout is intentionally not implemented.
    key = jax.random.PRNGKey(0)
    k1, k2, k3 = jax.random.split(key, 3)

    # --- primary check: small shapes implied by the module (fused path) -----
    N, M, NFEAT, NCLASS = 16, 8, 32, 16
    x, adj, weight, bias = _make_inputs(k1, N, M, NFEAT, NCLASS, p=0.4)
    fwd = jax.jit(hypergraph1_forward)
    y = jax.block_until_ready(fwd(x, adj, weight, bias))
    y_ref = _reference(x, adj, weight, bias)
    assert y.shape == (N, NCLASS)
    assert jnp.allclose(y, y_ref, atol=1e-5, rtol=1e-5), (
        "fused path mismatch, max err "
        f"{float(jnp.max(jnp.abs(y - y_ref)))}")

    # --- tiled path, single M tile (multi N tiles) ---------------------------
    x2, adj2, w2, b2 = _make_inputs(k2, 300, 40, NFEAT, NCLASS, p=0.15)
    fwd_tiled = jax.jit(functools.partial(hypergraph1_forward,
                                          force_tiled=True, tile_n=128))
    y2 = jax.block_until_ready(fwd_tiled(x2, adj2, w2, b2))
    y2_ref = _reference(x2, adj2, w2, b2)
    assert jnp.allclose(y2, y2_ref, atol=1e-5, rtol=1e-5), (
        "tiled path (m_tiles=1) mismatch, max err "
        f"{float(jnp.max(jnp.abs(y2 - y2_ref)))}")

    # --- tiled path, M tiled (hoisted XW + parallel phase-1 M axis) ----------
    x3, adj3, w3, b3 = _make_inputs(k3, 300, 200, NFEAT, NCLASS, p=0.05)
    fwd_mtiled = jax.jit(functools.partial(hypergraph1_forward,
                                           force_tiled=True, tile_n=128,
                                           tile_m=128))
    y3 = jax.block_until_ready(fwd_mtiled(x3, adj3, w3, b3))
    y3_ref = _reference(x3, adj3, w3, b3)
    assert jnp.allclose(y3, y3_ref, atol=1e-5, rtol=1e-5), (
        "tiled path (m_tiles>1) mismatch, max err "
        f"{float(jnp.max(jnp.abs(y3 - y3_ref)))}")

    print("KERNEL_OK")
</pallas_src>

<mosaic_0001>
module attributes {stable_mosaic.version = 11 : i64} {
  func.func @_fused_kernel(%arg0: memref<16x128xf32, #tpu.memory_space<vmem>>, %arg1: memref<16x128xbf16, #tpu.memory_space<vmem>>, %arg2: memref<128x128xf32, #tpu.memory_space<vmem>>, %arg3: memref<1x128xf32, #tpu.memory_space<vmem>>, %arg4: memref<16x128xf32, #tpu.memory_space<vmem>>) attributes {dimension_semantics = [], scalar_prefetch = 0 : i64, scratch_operands = 0 : i64, tpu.core_type = #tpu.core_type<tc>} {
    %c0 = arith.constant 0 : index
    %c0_0 = arith.constant 0 : index
    %0 = vector.load %arg1[%c0, %c0_0] : memref<16x128xbf16, #tpu.memory_space<vmem>>, vector<16x128xbf16>
    %1 = arith.extf %0 : vector<16x128xbf16> to vector<16x128xf32>
    %c0_1 = arith.constant 0 : index
    %c0_2 = arith.constant 0 : index
    %2 = vector.load %arg0[%c0_1, %c0_2] : memref<16x128xf32, #tpu.memory_space<vmem>>, vector<16x128xf32>
    %c0_3 = arith.constant 0 : index
    %c0_4 = arith.constant 0 : index
    %3 = vector.load %arg2[%c0_3, %c0_4] : memref<128x128xf32, #tpu.memory_space<vmem>>, vector<128x128xf32>
    %cst = arith.constant dense<0.000000e+00> : vector<16x128xf32>
    %4 = tpu.matmul %2, %3, %cst {dimension_numbers = #tpu.dot_dimension_numbers<[1], [0], [0], [1], [0, 0, 1, 1], [], []>} : vector<16x128xf32>, vector<128x128xf32>, vector<16x128xf32> -> vector<16x128xf32>
    %cst_5 = arith.constant dense<0.000000e+00> : vector<128x128xf32>
    %5 = tpu.matmul %1, %4, %cst_5 {dimension_numbers = #tpu.dot_dimension_numbers<[0], [0], [1], [1], [0, 1, 1, 1], [], []>} : vector<16x128xf32>, vector<16x128xf32>, vector<128x128xf32> -> vector<128x128xf32>
    %cst_6 = arith.constant dense<0.000000e+00> : vector<128xf32>
    %6 = vector.multi_reduction <add>, %1, %cst_6 [0] : vector<16x128xf32> to vector<128xf32>
    %7 = vector.shape_cast %6 : vector<128xf32> to vector<1x128xf32>
    %cst_7 = arith.constant 0.000000e+00 : f32
    %8 = vector.broadcast %cst_7 : f32 to vector<1x128xf32>
    %9 = arith.cmpf ogt, %7, %8 : vector<1x128xf32>
    %cst_8 = arith.constant 1.000000e+00 : f32
    %10 = vector.broadcast %cst_8 : f32 to vector<1x128xf32>
    %11 = arith.divf %10, %7 : vector<1x128xf32>
    %cst_9 = arith.constant 0.000000e+00 : f32
    %12 = vector.broadcast %cst_9 : f32 to vector<1x128xf32>
    %13 = arith.select %9, %11, %12 : vector<1x128xi1>, vector<1x128xf32>
    %cst_10 = arith.constant dense<0.000000e+00> : vector<16xf32>
    %14 = vector.multi_reduction <add>, %1, %cst_10 [1] : vector<16x128xf32> to vector<16xf32>
    %15 = vector.shape_cast %14 : vector<16xf32> to vector<16x1xf32>
    %cst_11 = arith.constant 0.000000e+00 : f32
    %16 = vector.broadcast %cst_11 : f32 to vector<16x1xf32>
    %17 = arith.cmpf ogt, %15, %16 : vector<16x1xf32>
    %cst_12 = arith.constant 1.000000e+00 : f32
    %18 = vector.broadcast %cst_12 : f32 to vector<16x1xf32>
    %19 = arith.divf %18, %15 : vector<16x1xf32>
    %cst_13 = arith.constant 0.000000e+00 : f32
    %20 = vector.broadcast %cst_13 : f32 to vector<16x1xf32>
    %21 = arith.select %17, %19, %20 : vector<16x1xi1>, vector<16x1xf32>
    %22 = vector.broadcast %13 : vector<1x128xf32> to vector<16x128xf32>
    %23 = arith.mulf %1, %22 : vector<16x128xf32>
    %cst_14 = arith.constant dense<0.000000e+00> : vector<16x128xf32>
    %24 = tpu.matmul %23, %5, %cst_14 {dimension_numbers = #tpu.dot_dimension_numbers<[1], [0], [0], [1], [0, 0, 1, 1], [], []>} : vector<16x128xf32>, vector<128x128xf32>, vector<16x128xf32> -> vector<16x128xf32>
    %25 = vector.broadcast %21 : vector<16x1xf32> to vector<16x128xf32>
    %26 = arith.mulf %24, %25 : vector<16x128xf32>
    %c0_15 = arith.constant 0 : index
    %c0_16 = arith.constant 0 : index
    %27 = vector.load %arg3[%c0_15, %c0_16] : memref<1x128xf32, #tpu.memory_space<vmem>>, vector<1x128xf32>
    %28 = vector.broadcast %27 : vector<1x128xf32> to vector<16x128xf32>
    %29 = arith.addf %26, %28 : vector<16x128xf32>
    %cst_17 = arith.constant 0.000000e+00 : f32
    %30 = vector.broadcast %cst_17 : f32 to vector<16x128xf32>
    %31 = arith.maximumf %29, %30 : vector<16x128xf32>
    %c0_18 = arith.constant 0 : index
    %c0_19 = arith.constant 0 : index
    %32 = vector.load %arg4[%c0_18, %c0_19] : memref<16x128xf32, #tpu.memory_space<vmem>>, vector<16x128xf32>
    tpu.vector_store %arg4[%c0_18, %c0_19], %31 {strides = array<i32>} : memref<16x128xf32, #tpu.memory_space<vmem>>, vector<16x128xf32>,
    return
  }
}

</mosaic_0001>

<bundles_post_ra>
// kernel: hypergraph1_forward.1
= control target key start
LH: loop header
LB: loop body
LE: loop exit
PB: predicated region body
PF: predicated region fallthrough
CT: control target
= control target key end

     0   :  { %s506_s0 = inlined_call_operand.vmem [shape: f32[16,128], index: 0, kind: input, shape index: {}]   ;;  %s507_s1 = inlined_call_operand.vmem [shape: bf16[16,128], index: 1, kind: input, shape index: {}]   ;;  %s508_s2 = inlined_call_operand.vmem [shape: f32[128,128], index: 2, kind: input, shape index: {}]   ;;  %s509_s3 = inlined_call_operand.vmem [shape: f32[1,128], index: 3, kind: input, shape index: {}]   ;;  %s510_s4 = inlined_call_operand.hbm [shape: f32[16,128], index: 4, kind: output, shape index: {}]  }
   0x1   :  { %v39_v0 = vld [vmem:[%s508_s2 + $0x78] sm:$0xff]  ;;  %v38_v1 = vld [vmem:[%s508_s2 + $0x70] sm:$0xff]  ;;  %v343_v2 = vld [vmem:[%s507_s1] sm:$0xff]  }
   0x2   :  { %40 = vmatpush.msra.mxu0 %v39_v0  ;;  %v424_v3 = vunpack.c.l.bf16 %v343_v2  ;;  %v37_v4 = vld [vmem:[%s508_s2 + $0x68] sm:$0xff]  ;;  %v36_v5 = vld [vmem:[%s508_s2 + $0x60] sm:$0xff]  ;;  %v35_v6 = vld [vmem:[%s508_s2 + $0x58] sm:$0xff] }
   0x4   :  { %41 = vmatpush.msra.mxu0 %v38_v1  ;;  %63 = vxpose.xlu0.b32.start [1/2] (short) %v424_v3, 128 }
   0x5   :  { %233 = vadd.xlane.f32.xlu1 %v424_v3 }
   0x6   :  { %42 = vmatpush.msra.mxu0 %v37_v4 }
   0x7   :  { %9 = vsyncpa [#allocation3], 0  ;;  %v437_v7 = vunpack.c.h.bf16 %v343_v2  ;;  %v34_v8 = vld [vmem:[%s508_s2 + $0x50] sm:$0xff]  ;;  %v33_v9 = vld [vmem:[%s508_s2 + $0x48] sm:$0xff]  ;;  %vm95_vm0 = vcmask 130048   ;;  %s387_s26 = smov [#allocation2]  }
   0x8   :  { %43 = vmatpush.msra.mxu0 %v36_v5  ;;  %v32_v10 = vld [vmem:[%s508_s2 + $0x40] sm:$0xff]  ;;  %v31_v11 = vld [vmem:[%s508_s2 + $0x38] sm:$0xff]  ;;  %v30_v12 = vld [vmem:[%s508_s2 + $0x30] sm:$0xff]  ;;  %s312_s1 = sshll.u32 %s387_s26, 4  ;;  %s388_s29 = smov 128   ;;  %s313_s1 = int_to_ptr.vmem [resolvable:$true] %s312_s1 }
   0x9   :  { %v29_v13 = vld [vmem:[%s508_s2 + $0x28] sm:$0xff]  ;;  %v28_v14 = vld [vmem:[%s508_s2 + $0x20] sm:$0xff]  ;;  %v27_v15 = vld [vmem:[%s508_s2 + $0x18] sm:$0xff]  ;;  %v209_v42 = vadd.f32 %v437_v7, %v424_v3  ;;  %s389_s30 = smov 8  }
   0xa   :  { %44 = vmatpush.msra.mxu0 %v35_v6  ;;  %v26_v16 = vld [vmem:[%s508_s2 + $0x10] sm:$0xff]  ;;  %v25_v17 = vld [vmem:[%s508_s2 + $0x8] sm:$0xff]  ;;  %v24_v18 = vld [vmem:[%s508_s2] sm:$0xff] }
   0xb   :  { %v22_v19 = vld [vmem:[%s506_s0] sm:$0xff]  ;;  %v23_v20 = vld [vmem:[%s506_s0 + $0x8] sm:$0xff]  ;;  %v210_v45 = vrot.slane %v209_v42, 4 }
   0xc   :  { %45 = vmatpush.msra.mxu0 %v34_v8  ;;  %64 = vxpose.xlu0.b32.end [2/2] (short) %v437_v7, 128 }
   0xd   :  { %235 = vadd.xlane.f32.xlu1 %v437_v7  ;;  %v211_v46 = vadd.f32 %v210_v45, %v209_v42 }
   0xe   :  { %46 = vmatpush.msra.mxu0 %v33_v9 }
   0xf   :  { %v212_v48 = vrot.slane %v211_v46, 2 }
  0x10   :  { %47 = vmatpush.msra.mxu0 %v32_v10 }
  0x11   :  { %v213_v50 = vadd.f32 %v212_v48, %v211_v46 }
  0x12   :  { %48 = vmatpush.msra.mxu0 %v31_v11 }
  0x13   :  { %v214_v52 = vrot.slane %v213_v50, 1 }
  0x14   :  { %49 = vmatpush.msra.mxu0 %v30_v12 }
  0x15   :  { %v215_v54 = vadd.f32 %v214_v52, %v213_v50 }
  0x16   :  { %50 = vmatpush.msra.mxu0 %v29_v13 }
  0x17   :  { %355 = vrcp.f32 %v215_v54  ;;  %vm222_vm1 = vweird.f32 %v215_v54  ;;  %v228_v1 = vand.u32 2147483648, %v215_v54  ;;  %v226_v4 = vand.u32 2147483647, %v215_v54 }
  0x18   :  { %51 = vmatpush.msra.mxu0 %v28_v14  ;;  %vm216_vm5 = vcmp.gt.f32.partialorder %v215_v54, 0.0 }
  0x19   :  { %v229_v6 = vor.u32 1.1754944e-38, %v228_v1  ;;  %vm227_vm4 = vcmp.eq.f32.partialorder %v226_v4, 8.507059e+37 }
  0x1a   :  { %52 = vmatpush.msra.mxu0 %v27_v15 }
  0x1c   :  { %53 = vmatpush.msra.mxu0 %v26_v16 }
  0x1d   :  { %v356_v57 = vpop.eup %355 }
  0x1e   :  { %54 = vmatpush.msra.mxu0 %v25_v17  ;;  %v218_v59 = vmul.f32 %v356_v57, %v215_v54  ;;  %vm223_vm2 = vweird.f32 %v356_v57 }
  0x1f   :  { %vm224_vm3 = vmor %vm222_vm1, %vm223_vm2 }
  0x20   :  { %55 = vmatpush.msra.mxu0 %v24_v18  ;;  %v219_v61 = vsub.f32 1.0, %v218_v59 }
  0x21   :  { %56 = vmatmul.f32.vlgmr.msra.gmra.mxu0 %v22_v19 }
  0x22   :  { %v220_v63 = vmul.f32 %v356_v57, %v219_v61 }
  0x24   :  { %v221_v2 = vadd.f32 %v356_v57, %v220_v63 }
  0x26   :  { %v225_v8 = vsel %vm224_vm3, %v356_v57, %v221_v2 }
  0x27   :  { %v230_v9 = vsel %vm227_vm4, %v229_v6, %v225_v8 }
  0x28   :  { %v232_v10 = vsel %vm216_vm5, %v230_v9, 0.0 }
  0x29   :  { %59 = vmatmul.f32.gmra.mxu0 %v23_v20  ;;  %v271_v11 = vmul.f32 %v424_v3, %v232_v10  ;;  %v272_v12 = vmul.f32 %v437_v7, %v232_v10 }
  0x78   :  { %v234_v13 = vpop.xlane.xlu1 %233 }
  0x79   :  { %357 = vrcp.f32 %v234_v13  ;;  %vm244_vm6 = vweird.f32 %v234_v13  ;;  %vm237_vm12 = vcmp.gt.f32.partialorder %v234_v13, 0.0 }
  0x7f   :  { %v358_v15 = vpop.eup %357 }
  0x80   :  { %v236_v14 = vpop.xlane.xlu1 %235  ;;  %v240_v16 = vmul.f32 %v358_v15, %v234_v13  ;;  %vm245_vm7 = vweird.f32 %v358_v15 }
  0x81   :  { %359 = vrcp.f32 %v236_v14  ;;  %vm246_vm8 = vmor %vm244_vm6, %vm245_vm7  ;;  %vm259_vm10 = vweird.f32 %v236_v14  ;;  %vm238_vm15 = vcmp.gt.f32.partialorder %v236_v14, 0.0 }
  0x82   :  { %v241_v17 = vsub.f32 1.0, %v240_v16 }
  0x84   :  { %v242_v20 = vmul.f32 %v358_v15, %v241_v17 }
  0x87   :  { %v360_v18 = vpop.eup %359 }
  0x88   :  { %v255_v19 = vmul.f32 %v360_v18, %v236_v14  ;;  %vm260_vm11 = vweird.f32 %v360_v18 }
  0x89   :  { %vm261_vm13 = vmor %vm259_vm10, %vm260_vm11 }
  0x8a   :  { %v256_v3 = vsub.f32 1.0, %v255_v19 }
  0x8c   :  { %v257_v7 = vmul.f32 %v360_v18, %v256_v3 }
  0x9e   :  { %v57_v21 = vpop.f32.mrf.mxu0 }
  0xa6   :  { %v60_v22 = vpop.f32.mrf.mxu0 }
  0xa7   :  { %158 = vmatpush.msra.mxu1 %v60_v22  ;;  %346 = vmatpush.msra.mxu2 %v60_v22 }
  0xa8   :  { %v79_v23 = vpop.trf.xlu0  ;;  %347 = vmatpush.msra.mxu3 %v60_v22  ;;  %v243_v22 = vadd.f32 %v358_v15, %v242_v20 }
  0xa9   :  { %159 = vmatpush.msra.mxu1 %v57_v21  ;;  %348 = vmatpush.msra.mxu2 %v57_v21 }
  0xaa   :  { %326 = vmatmul.msk.f32.vlgmr.msra.gmra.mxu1 %vm95_vm0, %v79_v23  ;;  %349 = vmatpush.msra.mxu3 %v57_v21  ;;  %v250_v21 = vand.u32 2147483648, %v234_v13  ;;  %v248_v23 = vand.u32 2147483647, %v234_v13 }
  0xac   :  { %vm249_vm9 = vcmp.eq.f32.partialorder %v248_v23, 8.507059e+37 }
  0xb0   :  { %v80_v24 = vpop.trf.xlu0 }
  0xb2   :  { %327 = vmatmul.msk.f32.gmra.mxu1 %vm95_vm0, %v80_v24  ;;  %v251_v24 = vor.u32 1.1754944e-38, %v250_v21 }
  0xb8   :  { %v81_v25 = vpop.trf.xlu0 }
  0xba   :  { %328 = vmatmul.msk.f32.gmra.mxu1 %vm95_vm0, %v81_v25  ;;  %v247_v25 = vsel %vm246_vm8, %v358_v15, %v243_v22 }
  0xc0   :  { %v82_v26 = vpop.trf.xlu0 }
  0xc2   :  { %329 = vmatmul.msk.f32.gmra.mxu1 %vm95_vm0, %v82_v26  ;;  %v252_v26 = vsel %vm249_vm9, %v251_v24, %v247_v25 }
  0xc8   :  { %v83_v27 = vpop.trf.xlu0 }
  0xca   :  { %330 = vmatmul.msk.f32.gmra.mxu1 %vm95_vm0, %v83_v27  ;;  %v265_v27 = vand.u32 2147483648, %v236_v14 }
  0xd0   :  { %v84_v28 = vpop.trf.xlu0 }
  0xd2   :  { %331 = vmatmul.msk.f32.gmra.mxu1 %vm95_vm0, %v84_v28  ;;  %v258_v28 = vadd.f32 %v360_v18, %v257_v7 }
  0xd8   :  { %v85_v29 = vpop.trf.xlu0 }
  0xda   :  { %332 = vmatmul.msk.f32.gmra.mxu1 %vm95_vm0, %v85_v29  ;;  %v263_v29 = vand.u32 2147483647, %v236_v14 }
  0xdc   :  { %vm264_vm14 = vcmp.eq.f32.partialorder %v263_v29, 8.507059e+37 }
  0xe0   :  { %v86_v30 = vpop.trf.xlu0 }
  0xe1   :  { %333 = vmatmul.msk.f32.vlgmr.msra.gmra.mxu2 %vm95_vm0, %v86_v30  ;;  %v354_v30 = vld [vmem:[%s509_s3] ss:$0 sm:$0xff]  ;;  %s314_s3 = sshll.u32 %s510_s4, 4  ;;  %s315_s3 = int_to_ptr.hbm [resolvable:$true] %s314_s3 }
  0xe8   :  { %v87_v31 = vpop.trf.xlu0 }
  0xe9   :  { %334 = vmatmul.msk.f32.gmra.mxu2 %vm95_vm0, %v87_v31  ;;  %v269_v31 = vsel %vm237_vm12, %v252_v26, 0.0 }
  0xf0   :  { %v88_v32 = vpop.trf.xlu0 }
  0xf1   :  { %335 = vmatmul.msk.f32.vlgmr.msra.gmra.mxu3 %vm95_vm0, %v88_v32 }
  0xf8   :  { %v89_v33 = vpop.trf.xlu0 }
  0xf9   :  { %336 = vmatmul.msk.f32.gmra.mxu3 %vm95_vm0, %v89_v33 }
 0x100   :  { %v90_v34 = vpop.trf.xlu0 }
 0x101   :  { %337 = vmatmul.msk.f32.gmra.mxu3 %vm95_vm0, %v90_v34  ;;  %v266_v34 = vor.u32 1.1754944e-38, %v265_v27 }
 0x108   :  { %v91_v35 = vpop.trf.xlu0 }
 0x109   :  { %338 = vmatmul.msk.f32.gmra.mxu3 %vm95_vm0, %v91_v35  ;;  %v262_v35 = vsel %vm261_vm13, %v360_v18, %v258_v28 }
 0x110   :  { %v92_v36 = vpop.trf.xlu0 }
 0x111   :  { %339 = vmatmul.msk.f32.gmra.mxu3 %vm95_vm0, %v92_v36 }
 0x118   :  { %v93_v37 = vpop.trf.xlu0 }
 0x119   :  { %340 = vmatmul.msk.f32.gmra.mxu3 %vm95_vm0, %v93_v37 }
 0x120   :  { %v94_v38 = vpop.trf.xlu0 }
 0x121   :  { %341 = vmatmul.msk.f32.gmra.mxu3 %vm95_vm0, %v94_v38  ;;  %v267_v38 = vsel %vm264_vm14, %v266_v34, %v262_v35 }
 0x127   :  { %v161_v40 = vpop.f32.mrf.mxu1 }
 0x12f   :  { %v164_v43 = vpop.f32.mrf.mxu1 }
 0x137   :  { %v167_v49 = vpop.f32.mrf.mxu1 }
 0x13f   :  { %v170_v53 = vpop.f32.mrf.mxu1 }
 0x147   :  { %v173_v56 = vpop.f32.mrf.mxu1 }
 0x14f   :  { %v176_v62 = vpop.f32.mrf.mxu1 }
 0x157   :  { %v179_v5 = vpop.f32.mrf.mxu1 }
 0x164   :  { %v182_v60 = vpop.f32.mrf.mxu2 }
 0x16c   :  { %v185_v0 = vpop.f32.mrf.mxu2 }
 0x174   :  { %v188_v39 = vpop.f32.mrf.mxu3 }
 0x17c   :  { %v191_v41 = vpop.f32.mrf.mxu3 }
 0x184   :  { %v194_v44 = vpop.f32.mrf.mxu3 }
 0x18c   :  { %v197_v47 = vpop.f32.mrf.mxu3 }
 0x194   :  { %v200_v51 = vpop.f32.mrf.mxu3 }
 0x19c   :  { %v203_v55 = vpop.f32.mrf.mxu3 }
 0x1a4   :  { %v206_v58 = vpop.f32.mrf.mxu3 }
 0x1a5   :  { %273 = vmatpush.msrb.mxu2 %v206_v58 }
 0x1a7   :  { %274 = vmatpush.msrb.mxu2 %v203_v55 }
 0x1a9   :  { %275 = vmatpush.msrb.mxu2 %v200_v51 }
 0x1ab   :  { %276 = vmatpush.msrb.mxu2 %v197_v47 }
 0x1ad   :  { %277 = vmatpush.msrb.mxu2 %v194_v44 }
 0x1af   :  { %278 = vmatpush.msrb.mxu2 %v191_v41 }
 0x1b1   :  { %279 = vmatpush.msrb.mxu2 %v188_v39  ;;  %v270_v39 = vsel %vm238_vm15, %v267_v38, 0.0 }
 0x1b3   :  { %280 = vmatpush.msrb.mxu2 %v185_v0 }
 0x1b5   :  { %281 = vmatpush.msrb.mxu2 %v182_v60 }
 0x1b7   :  { %282 = vmatpush.msrb.mxu2 %v179_v5 }
 0x1b9   :  { %283 = vmatpush.msrb.mxu2 %v176_v62 }
 0x1bb   :  { %284 = vmatpush.msrb.mxu2 %v173_v56 }
 0x1bd   :  { %285 = vmatpush.msrb.mxu2 %v170_v53 }
 0x1bf   :  { %286 = vmatpush.msrb.mxu2 %v167_v49 }
 0x1c1   :  { %287 = vmatpush.msrb.mxu2 %v164_v43 }
 0x1c3   :  { %288 = vmatpush.msrb.mxu2 %v161_v40 }
 0x1c4   :  { %289 = vmatmul.f32.vlgmr.msrb.gmra.mxu2 %v271_v11 }
 0x1cc   :  { %292 = vmatmul.f32.gmra.mxu2 %v272_v12 }
 0x247   :  { %v290_v32 = vpop.f32.mrf.mxu2 }
 0x248   :  { %v296_v33 = vmul.f32 %v290_v32, %v269_v31 }
 0x24a   :  { %v302_v36 = vadd.f32 %v354_v30, %v296_v33 }
 0x24c   :  { %v304_v37 = vmax.f32 %v302_v36, 0.0 }
 0x24e   :  { %306 = vst [vmem:[#allocation2] sm:$0xff] %v304_v37 }
 0x24f   :  { %v293_v40 = vpop.f32.mrf.mxu2 }
 0x250   :  { %v297_v41 = vmul.f32 %v293_v40, %v270_v39 }
 0x252   :  { %v303_v42 = vadd.f32 %v354_v30, %v297_v41 }
 0x254   :  { %v305_v43 = vmax.f32 %v303_v42, 0.0 }
 0x256   :  { %307 = vst [vmem:[#allocation2 + $0x8] sm:$0xff] %v305_v43 }
 0x257   :  { %320 = dma.vmem_to_hbm [thread:$0]  %s313_s1, 256, %s315_s3, [#allocation3], %s388_s29, %s388_s29, %s389_s30  }
 0x258   :  { %385 = dma.done.wait [#allocation3], 256  }
 0x259   :  { %386 = vsyncadd [#allocation3], 4294967040 }
 0x25a   :  { %325 = vsyncpa [#allocation3], 1 }

</bundles_post_ra>
